<compile_context>
chip_gen: v6e
topology: v6e:2x2x1
jax: 0.10.0
libtpu: 0.0.40
codegen_flags: <defaults>
</compile_context>

<pallas_src>
import functools

import jax
import jax.numpy as jnp
from jax.experimental import pallas as pl
from jax.experimental.pallas import tpu as pltpu


def _feature_squeeze_kernel(x_ref, o_ref, *, scale, inv_scale):
    # quantized = floor(x * 2**bit_depth) / 2**bit_depth
    # Compute in f32 (explicit, so bf16 inputs don't hit implicit packing churn
    # on v5e); scale is a power of two, so mul-by-reciprocal is exact.
    x = x_ref[...].astype(jnp.float32)
    o_ref[...] = (jnp.floor(x * scale) * inv_scale).astype(o_ref.dtype)


_LANE_CANDIDATES = (4096, 2048, 1024, 512, 256, 128)
# ~2 MiB per tile => in+out double-buffered = ~8 MiB VMEM (safe on v5e/v6e/v7x).
_TARGET_TILE_BYTES = 2 * 1024 * 1024


def feature_squeezing(x, bit_depth: int):
    """Applies floor(x * 2**bit_depth) / 2**bit_depth elementwise.

    x: any-rank float array (e.g. NCHW). Returns same shape/dtype.
    """
    orig_shape = x.shape
    orig_dtype = x.dtype

    flat = x.reshape(-1)
    n = flat.shape[0]

    # Pad only up to a 128-lane multiple, and only when actually needed.
    padded_n = pl.cdiv(n, 128) * 128
    pad = padded_n - n
    if pad:
        flat = jnp.pad(flat, (0, pad))

    # Widest lane-dense layout that exactly divides the (possibly padded) length.
    cols = next(c for c in _LANE_CANDIDATES if padded_n % c == 0)
    rows = padded_n // cols
    x2d = flat.reshape(rows, cols)

    # Row-block sized for ~2 MiB tiles; keep it a multiple of 8 (sublane) or the
    # full row extent. Pallas masks the partial edge block when rows % block != 0.
    itemsize = jnp.dtype(orig_dtype).itemsize
    desired_rows = max(8, (_TARGET_TILE_BYTES // (cols * itemsize)) // 8 * 8)
    block_rows = rows if rows <= desired_rows else desired_rows
    grid = (pl.cdiv(rows, block_rows),)

    scale = float(2 ** bit_depth)
    kernel = functools.partial(
        _feature_squeeze_kernel, scale=scale, inv_scale=1.0 / scale)

    out2d = pl.pallas_call(
        kernel,
        out_shape=jax.ShapeDtypeStruct((rows, cols), orig_dtype),
        grid_spec=pltpu.PrefetchScalarGridSpec(
            num_scalar_prefetch=0,
            grid=grid,
            in_specs=[pl.BlockSpec((block_rows, cols), lambda i: (i, 0))],
            out_specs=pl.BlockSpec((block_rows, cols), lambda i: (i, 0)),
        ),
        compiler_params=pltpu.CompilerParams(
            dimension_semantics=("parallel",),
        ),
    )(x2d)

    out_flat = out2d.reshape(-1)
    if pad:
        out_flat = out_flat[:n]
    return out_flat.reshape(orig_shape)


if __name__ == "__main__":
    key = jax.random.PRNGKey(0)
    # NCHW input, small shapes: batch=2, channels=4, spatial=16x16
    x = jax.random.uniform(key, (2, 4, 16, 16), dtype=jnp.float32)

    bit_depth = 3
    out = feature_squeezing(x, bit_depth)
    out = jax.block_until_ready(out)

    # reference check (pure JAX, mirrors the PyTorch forward)
    ref = jnp.floor(x * 2 ** bit_depth) / 2 ** bit_depth
    assert out.shape == x.shape and out.dtype == x.dtype
    assert jnp.allclose(out, ref, atol=1e-6), "mismatch vs reference"

    print("KERNEL_OK")
</pallas_src>

<mosaic_0001>
module attributes {stable_mosaic.version = 11 : i64} {
  func.func @_feature_squeeze_kernel(%arg0: i32, %arg1: memref<1x2048xf32, #tpu.memory_space<vmem>>, %arg2: memref<1x2048xf32, #tpu.memory_space<vmem>>) attributes {dimension_semantics = [#tpu.dimension_semantics<parallel>], iteration_bounds = array<i64: 1>, scalar_prefetch = 0 : i64, scratch_operands = 0 : i64, tpu.core_type = #tpu.core_type<tc>, window_params = [{transform_indices = @transform_0, window_bounds = array<i64: 1, 2048>}, {transform_indices = @transform_1, window_bounds = array<i64: 1, 2048>}]} {
    %c0 = arith.constant 0 : index
    %c0_0 = arith.constant 0 : index
    %0 = vector.load %arg1[%c0, %c0_0] : memref<1x2048xf32, #tpu.memory_space<vmem>>, vector<1x2048xf32>
    %cst = arith.constant 8.000000e+00 : f32
    %1 = vector.broadcast %cst : f32 to vector<1x2048xf32>
    %2 = arith.mulf %0, %1 : vector<1x2048xf32>
    %3 = math.floor %2 : vector<1x2048xf32>
    %cst_1 = arith.constant 1.250000e-01 : f32
    %4 = vector.broadcast %cst_1 : f32 to vector<1x2048xf32>
    %5 = arith.mulf %3, %4 : vector<1x2048xf32>
    %c0_2 = arith.constant 0 : index
    %c0_3 = arith.constant 0 : index
    %6 = vector.load %arg2[%c0_2, %c0_3] : memref<1x2048xf32, #tpu.memory_space<vmem>>, vector<1x2048xf32>
    tpu.vector_store %arg2[%c0_2, %c0_3], %5 {strides = array<i32>} : memref<1x2048xf32, #tpu.memory_space<vmem>>, vector<1x2048xf32>,
    return
  }
  func.func @transform_0(%arg0: i32) -> (i32, i32) {
    %c0_i32 = arith.constant 0 : i32
    %c0_i32_0 = arith.constant 0 : i32
    return %arg0, %c0_i32 : i32, i32
  }
  func.func @transform_1(%arg0: i32) -> (i32, i32) {
    %c0_i32 = arith.constant 0 : i32
    %c0_i32_0 = arith.constant 0 : i32
    return %arg0, %c0_i32 : i32, i32
  }
}

</mosaic_0001>

<bundles_post_ra>
// kernel: tpu_custom_call.1
= control target key start
LH: loop header
LB: loop body
LE: loop exit
PB: predicated region body
PF: predicated region fallthrough
CT: control target
= control target key end

     0   :  { %6 = vsyncpa [#allocation3], 0  ;;  %s110_s0 = inlined_call_operand.hbm [shape: f32[1,2048], index: 0, kind: input, shape index: {}]   ;;  %s111_s1 = inlined_call_operand.hbm [shape: f32[1,2048], index: 1, kind: output, shape index: {}]  }
   0x1   :  { %7 = vsyncpa [#allocation4], 0  ;;  %s92_s6 = smov [#allocation2]  }
   0x2   :  { %s14_s7 = sshll.u32 %s92_s6, 4  ;;  %s15_s7 = int_to_ptr.vmem [resolvable:$true] %s14_s7 }
   0x3   :  { %s56_s8 = scalar_lea.vmem %s15_s7, 256  ;;  %p61_p1 = scmp.lt.s32.totalorder %s15_s7, %s15_s7 }
   0x4   :  { %p57_p0 = scmp.ne.s32.totalorder %s15_s7, %s56_s8  ;;  %p62_p2 = scmp.lt.s32.totalorder %s56_s8, %s56_s8 }
   0x6   :  { %p63_p3 = por %p62_p2, %p61_p1 }
   0x8   :  { %p64_p4 = pnand %p63_p3, %p57_p0 }
   0xa   :  { %67 = shalt.err (!%p64_p4)
}
   0xb   :  { %17 = dma.hbm_to_vmem [thread:$0]  %s110_s0, 256, %s15_s7, [#allocation3]  }
   0xc   :  { %88 = dma.done.wait [#allocation3], 256  }
   0xd   :  { %89 = vsyncadd [#allocation3], 4294967040  ;;  %v21_v0 = vld [vmem:[#allocation2] sm:$0xff]  ;;  %v22_v1 = vld [vmem:[#allocation2 + $0x8] sm:$0xff]  ;;  %s93_s11 = smov [#allocation5]  }
   0xe   :  { %v23_v2 = vmul.f32 8.0, %v21_v0  ;;  %v24_v3 = vmul.f32 8.0, %v22_v1  ;;  %s37_s12 = sshll.u32 %s93_s11, 4  ;;  %s38_s12 = int_to_ptr.vmem [resolvable:$true] %s37_s12 }
   0xf   :  { %s68_s13 = scalar_lea.vmem %s38_s12, 256  ;;  %p73_p6 = scmp.lt.s32.totalorder %s38_s12, %s38_s12 }
  0x10   :  { %v25_v4 = vfloor.f32 %v23_v2  ;;  %v26_v5 = vfloor.f32 %v24_v3  ;;  %p69_p5 = scmp.ne.s32.totalorder %s38_s12, %s68_s13  ;;  %p74_p7 = scmp.lt.s32.totalorder %s68_s13, %s68_s13 }
  0x12   :  { %v27_v6 = vmul.f32 0.125, %v25_v4  ;;  %v28_v7 = vmul.f32 0.125, %v26_v5  ;;  %p75_p8 = por %p74_p7, %p73_p6 }
  0x14   :  { %29 = vst [vmem:[#allocation5] sm:$0xff] %v27_v6  ;;  %30 = vst [vmem:[#allocation5 + $0x8] sm:$0xff] %v28_v7  ;;  %p76_p9 = pnand %p75_p8, %p69_p5 }
  0x16   :  { %79 = shalt.err (!%p76_p9)
}
  0x17   :  { %40 = dma.vmem_to_hbm [thread:$0]  %s38_s12, 256, %s111_s1, [#allocation4]  }
  0x18   :  { %90 = dma.done.wait [#allocation4], 256  }
  0x19   :  { %91 = vsyncadd [#allocation4], 4294967040 }
  0x1a   :  { %44 = vsyncpa [#allocation3], 1 }
  0x1b   :  { %45 = vsyncpa [#allocation4], 1 }

</bundles_post_ra>
